<compile_context>
chip_gen: v6e
topology: v6e:2x2x1
jax: 0.10.0
libtpu: 0.0.40
codegen_flags: <defaults>
</compile_context>

<pallas_src>
import numpy as np

import jax
import jax.numpy as jnp
from jax.experimental import pallas as pl
from jax.experimental.pallas import tpu as pltpu

N_MAX = 128          # padded node count per batched graph (per timestep)
C_PAD = 128          # padded channel count (lanes)
EPS_BN = 1e-5        # BatchNorm eps (PyTorch default)
HID = 512            # LSTM hidden size
PROJ = 2             # LSTM proj size
P_PAD = 128          # padded proj size (lanes)
B_PAD = 8            # padded LSTM batch (sublanes)
T_BLK = 8            # LSTM timesteps processed per grid iteration
TMG = 64             # row tile for the time-batched gate matmul

POOLING_SIZE = np.array([0.023121387283236993, 0.011538461538461539])
POOLING_OUTPUTS = 32


# --------------------------------------------------------------------------
# Pallas kernels
# --------------------------------------------------------------------------

def _conv_elu_bn_kernel(n_ref, s_ref, w_ref, invdeg_ref, gamma_ref, beta_ref, out_ref):
    """Fused SplineConv matmul (pre-aggregated basis features) + mean-agg scale
    + ELU + training-mode BatchNorm over the valid nodes of one slab."""
    n = n_ref[pl.program_id(0)]
    y = jnp.dot(s_ref[0], w_ref[...], preferred_element_type=jnp.float32)
    y = y * invdeg_ref[0]                                          # aggr='mean' (1/deg per node)
    # NOTE: exp(min(y,0))-1 instead of expm1 (expm1 lowering not guaranteed on Mosaic).
    y = jnp.where(y > 0, y, jnp.exp(jnp.minimum(y, 0.0)) - 1.0)    # ELU(alpha=1)
    rid = jax.lax.broadcasted_iota(jnp.int32, y.shape, 0)
    mask = (rid < n).astype(jnp.float32)
    ninv = 1.0 / n.astype(jnp.float32)
    mean = jnp.sum(y * mask, axis=0, keepdims=True) * ninv
    var = jnp.sum(((y - mean) * mask) ** 2, axis=0, keepdims=True) * ninv
    yn = (y - mean) * jax.lax.rsqrt(var + EPS_BN) * gamma_ref[...] + beta_ref[...]
    out_ref[0] = yn * mask


@jax.jit
def conv_elu_bn_call(n_arr, S, W, invdeg, gamma, beta):
    T, Np, K = S.shape
    Co = W.shape[1]
    grid_spec = pltpu.PrefetchScalarGridSpec(
        num_scalar_prefetch=1,
        grid=(T,),
        in_specs=[
            pl.BlockSpec((1, Np, K), lambda g, n: (g, 0, 0)),
            pl.BlockSpec((K, Co), lambda g, n: (0, 0)),
            pl.BlockSpec((1, Np, 1), lambda g, n: (g, 0, 0)),
            pl.BlockSpec((1, Co), lambda g, n: (0, 0)),
            pl.BlockSpec((1, Co), lambda g, n: (0, 0)),
        ],
        out_specs=pl.BlockSpec((1, Np, Co), lambda g, n: (g, 0, 0)),
    )
    return pl.pallas_call(
        _conv_elu_bn_kernel,
        out_shape=jax.ShapeDtypeStruct((T, Np, Co), jnp.float32),
        grid_spec=grid_spec,
        compiler_params=pltpu.CompilerParams(dimension_semantics=("parallel",)),
    )(n_arr, S, W, invdeg, gamma, beta)


def _gates_x_kernel(x_ref, wih_ref, b_ref, out_ref):
    """Time-batched input projection: gates_x = x @ Wih^T + (b_ih + b_hh)."""
    out_ref[...] = (jnp.dot(x_ref[...], wih_ref[...], preferred_element_type=jnp.float32)
                    + b_ref[...])


def gates_x_call(x_flat, wih_bf16, bias):
    R, D = x_flat.shape
    G4 = wih_bf16.shape[1]
    grid_spec = pltpu.PrefetchScalarGridSpec(
        num_scalar_prefetch=0,
        grid=(R // TMG,),
        in_specs=[
            pl.BlockSpec((TMG, D), lambda i: (i, 0)),
            pl.BlockSpec((D, G4), lambda i: (0, 0)),
            pl.BlockSpec((1, G4), lambda i: (0, 0)),
        ],
        out_specs=pl.BlockSpec((TMG, G4), lambda i: (i, 0)),
    )
    return pl.pallas_call(
        _gates_x_kernel,
        out_shape=jax.ShapeDtypeStruct((R, G4), jnp.float32),
        grid_spec=grid_spec,
        compiler_params=pltpu.CompilerParams(dimension_semantics=("parallel",)),
    )(x_flat, wih_bf16, bias)


def _lstm_kernel(gx_ref, whh_ref, whr_ref, out_ref, h_sc, c_sc):
    """T_BLK LSTM steps per grid iteration.  Consumes precomputed gates_x,
    computes the recurrent contribution with two broadcast FMAs (proj_size=2),
    and carries h (projected, padded to 128 lanes) and c in VMEM scratch."""
    @pl.when(pl.program_id(0) == 0)
    def _():
        h_sc[...] = jnp.zeros_like(h_sc)
        c_sc[...] = jnp.zeros_like(c_sc)

    whh = whh_ref[...]
    whh0 = whh[0:1, :]                                              # (1, 4*HID)
    whh1 = whh[1:2, :]

    def step(t, carry):
        gx = gx_ref[t]                                              # (B_PAD, 4*HID)
        h = h_sc[...]                                               # (B_PAD, P_PAD)
        # h @ Whh with only PROJ=2 nonzero rows -> two VPU FMAs (no MXU on the
        # serial critical path for this term).
        gates = gx + h[:, 0:1] * whh0 + h[:, 1:2] * whh1
        i = jax.nn.sigmoid(gates[:, 0:HID])
        f = jax.nn.sigmoid(gates[:, HID:2 * HID])
        g = jnp.tanh(gates[:, 2 * HID:3 * HID])
        o = jax.nn.sigmoid(gates[:, 3 * HID:4 * HID])
        c = f * c_sc[...] + i * g
        h_new = jnp.dot(o * jnp.tanh(c), whr_ref[...],
                        preferred_element_type=jnp.float32)         # (B_PAD, P_PAD)
        c_sc[...] = c
        h_sc[...] = h_new
        out_ref[t] = h_new
        return carry

    jax.lax.fori_loop(0, T_BLK, step, 0, unroll=True)


def lstm_call(gates_x, whh_pad, whr_pad):
    S_pad, Bp, G4 = gates_x.shape
    grid_spec = pltpu.PrefetchScalarGridSpec(
        num_scalar_prefetch=0,
        grid=(S_pad // T_BLK,),
        in_specs=[
            pl.BlockSpec((T_BLK, Bp, G4), lambda b: (b, 0, 0)),
            pl.BlockSpec((B_PAD, G4), lambda b: (0, 0)),
            pl.BlockSpec((HID, P_PAD), lambda b: (0, 0)),
        ],
        out_specs=pl.BlockSpec((T_BLK, Bp, P_PAD), lambda b: (b, 0, 0)),
        scratch_shapes=[pltpu.VMEM((Bp, P_PAD), jnp.float32),
                        pltpu.VMEM((Bp, HID), jnp.float32)],
    )
    return pl.pallas_call(
        _lstm_kernel,
        out_shape=jax.ShapeDtypeStruct((S_pad, Bp, P_PAD), jnp.float32),
        grid_spec=grid_spec,
        compiler_params=pltpu.CompilerParams(dimension_semantics=("arbitrary",)),
    )(gates_x, whh_pad, whr_pad)


@jax.jit
def lstm_forward(x_seq_pad, wih_bf16, bias, whh_pad, whr_pad):
    S_pad, Bp, D = x_seq_pad.shape
    x_flat = x_seq_pad.reshape(S_pad * Bp, D).astype(jnp.bfloat16)
    gates_x = gates_x_call(x_flat, wih_bf16, bias)                  # (S_pad*Bp, 4*HID) f32
    gates_x = gates_x.reshape(S_pad, Bp, 4 * HID)
    return lstm_call(gates_x, whh_pad, whr_pad)


# --------------------------------------------------------------------------
# Host-side graph glue (NumPy): spline basis / scatter aggregation / pooling
# --------------------------------------------------------------------------

def _spline_aggregate(x, edge_index, edge_attr, c_in):
    """Degree-1 open B-spline basis (kernel_size=2, dim=3) and per-target scatter sum."""
    src, dst = edge_index[0], edge_index[1]
    u = np.clip(edge_attr.astype(np.float64), 0.0, 1.0)
    E = u.shape[0]
    basis = np.ones((E, 8), dtype=np.float64)
    for k in range(8):
        b = np.ones(E, dtype=np.float64)
        for d in range(3):
            b = b * (u[:, d] if (k >> d) & 1 else (1.0 - u[:, d]))
        basis[:, k] = b
    xj = x[src].astype(np.float64)                                   # (E, c_in)
    weighted = (basis[:, :, None] * xj[:, None, :]).reshape(E, 8 * c_in)
    N = x.shape[0]
    S = np.zeros((N, 8 * c_in), dtype=np.float64)
    np.add.at(S, dst, weighted)
    deg = np.zeros((N,), dtype=np.float64)
    np.add.at(deg, dst, 1.0)
    inv_deg = np.where(deg > 0, 1.0 / np.maximum(deg, 1.0), 0.0)
    return S.astype(np.float32), inv_deg.astype(np.float32)


def conv_elu_bn_batched(xs, eis, eas, W, c_in, c_out):
    """One fused Conv+ELU+BN pallas_call over all T timesteps of this layer."""
    T = len(xs)
    K = 8 * c_in
    K_pad = ((K + 127) // 128) * 128
    K_pad = max(K_pad, 128)
    S_all = np.zeros((T, N_MAX, K_pad), np.float32)
    inv_all = np.zeros((T, N_MAX, 1), np.float32)
    n_all = np.zeros((T,), np.int32)
    for t in range(T):
        n = xs[t].shape[0]
        assert n <= N_MAX, f"graph at t={t} has {n} nodes > N_MAX={N_MAX}"
        S, inv_deg = _spline_aggregate(xs[t], eis[t], eas[t], c_in)
        S_all[t, :n, :K] = S
        inv_all[t, :n, 0] = inv_deg
        n_all[t] = n
    W_pad = np.zeros((K_pad, C_PAD), np.float32)
    W_pad[:K, :c_out] = W.reshape(K, c_out)
    gamma = np.zeros((1, C_PAD), np.float32); gamma[0, :c_out] = 1.0   # BN weight init
    beta = np.zeros((1, C_PAD), np.float32)                            # BN bias init
    out = conv_elu_bn_call(jnp.asarray(n_all), jnp.asarray(S_all), jnp.asarray(W_pad),
                           jnp.asarray(inv_all), jnp.asarray(gamma), jnp.asarray(beta))
    out = np.asarray(out)
    return [out[t, :int(n_all[t]), :c_out] for t in range(T)]


def max_pooling(x, pos, batch, edge_index, size_xy):
    """Voxel-grid MaxPooling + graph coarsening + Cartesian(norm=True) edge attrs."""
    cx = np.floor(pos[:, 0] / size_xy[0]).astype(np.int64)
    cy = np.floor(pos[:, 1] / size_xy[1]).astype(np.int64)
    key = (batch.astype(np.int64) << 42) + (cy << 21) + cx
    _, inv = np.unique(key, return_inverse=True)
    M = int(inv.max()) + 1
    c = x.shape[1]
    new_x = np.full((M, c), -np.inf, np.float32)
    np.maximum.at(new_x, inv, x)                                      # scatter-max features
    new_pos = np.zeros((M, 3), np.float64)
    cnt = np.zeros((M,), np.float64)
    np.add.at(new_pos, inv, pos.astype(np.float64))
    np.add.at(cnt, inv, 1.0)
    new_pos = (new_pos / cnt[:, None]).astype(np.float32)             # scatter-mean positions
    new_batch = np.zeros((M,), np.int64)
    new_batch[inv] = batch
    e_src, e_dst = inv[edge_index[0]], inv[edge_index[1]]
    keep = e_src != e_dst                                             # remove self loops
    ekey = np.unique(e_src[keep] * M + e_dst[keep])                   # coalesce
    new_ei = np.stack([ekey // M, ekey % M]).astype(np.int64)
    cart = new_pos[new_ei[0]] - new_pos[new_ei[1]]
    max_val = max(float(np.abs(cart).max()) if cart.size else 1.0, 1e-12)
    new_ea = (cart / (2.0 * max_val) + 0.5).astype(np.float32)        # Cartesian(norm=True, cat=False)
    return new_x, new_pos, new_batch, new_ei, new_ea


def max_pooling_x(x, pos2, batch, batch_size, c, size=0.25, slots=16):
    # TODO(synk): exact torch_cluster.voxel_grid cluster-id raveling is not reproduced;
    #             approximated with a fixed 4x4 voxel grid per graph (16 slots, zero-filled).
    vx = np.minimum(np.floor(pos2[:, 0] / size).astype(np.int64), 3)
    vy = np.minimum(np.floor(pos2[:, 1] / size).astype(np.int64), 3)
    slot = batch.astype(np.int64) * slots + vy * 4 + vx
    out = np.full((batch_size * slots, c), -np.inf, np.float32)
    np.maximum.at(out, slot, x)
    out[~np.isfinite(out)] = 0.0
    return out


def backbone_forward_all(data, params, batch_size):
    """Backbone for all timesteps, processed layer-by-layer with one batched
    pallas_call per layer (T slabs on a 'parallel' grid axis)."""
    T = len(data)
    xs = [d['x'].astype(np.float32) for d in data]
    poss = [d['pos'] for d in data]
    batches = [d['batch'] for d in data]
    eis = [d['edge_index'] for d in data]
    eas = [d['edge_attr'] for d in data]

    def layer(xs, name, ci, co):
        return conv_elu_bn_batched(xs, eis, eas, params[name], ci, co)

    xs = layer(xs, 'conv1', 1, 8)
    xs = layer(xs, 'conv2', 8, 16)
    xs = layer(xs, 'conv2_1', 16, 16)
    # pooling_after_conv2=True
    for t in range(T):
        xs[t], poss[t], batches[t], eis[t], eas[t] = max_pooling(
            xs[t], poss[t], batches[t], eis[t], POOLING_SIZE / 2.0)
    xs_sc = [x.copy() for x in xs]
    xs = layer(xs, 'conv3', 16, 16)
    xs = layer(xs, 'conv4', 16, 16)
    xs = [x + s for x, s in zip(xs, xs_sc)]
    xs = layer(xs, 'conv5', 16, POOLING_OUTPUTS)
    for t in range(T):
        xs[t], poss[t], batches[t], eis[t], eas[t] = max_pooling(
            xs[t], poss[t], batches[t], eis[t], POOLING_SIZE)
    xs_sc = [x.copy() for x in xs]
    xs = layer(xs, 'conv6', 32, 32)
    xs = layer(xs, 'conv7', 32, 32)
    xs = [x + s for x, s in zip(xs, xs_sc)]
    # more_block=True
    xs = layer(xs, 'conv6_1', 32, 32)
    xs = layer(xs, 'conv7_1', 32, 32)
    xs = [x + s for x, s in zip(xs, xs_sc)]
    outs = [max_pooling_x(xs[t], poss[t][:, :2], batches[t], batch_size, POOLING_OUTPUTS)
            for t in range(T)]
    return np.stack([o.reshape(batch_size, 16 * POOLING_OUTPUTS) for o in outs])  # (T, B, 512)


# --------------------------------------------------------------------------
# Deterministic parameter / data construction
# --------------------------------------------------------------------------

def init_params(key):
    params = {}
    specs = {'conv1': (1, 8), 'conv2': (8, 16), 'conv2_1': (16, 16),
             'conv3': (16, 16), 'conv4': (16, 16), 'conv5': (16, 32),
             'conv6': (32, 32), 'conv7': (32, 32), 'conv6_1': (32, 32), 'conv7_1': (32, 32)}
    for name, (ci, co) in specs.items():
        key, sub = jax.random.split(key)
        params[name] = np.asarray(0.2 * jax.random.normal(sub, (8, ci, co), jnp.float32))
    key, k1, k2, k3, k4, k5 = jax.random.split(key, 6)
    params['lstm_wih'] = np.asarray(0.02 * jax.random.normal(k1, (4 * HID, HID), jnp.float32))
    params['lstm_whh'] = np.asarray(0.02 * jax.random.normal(k2, (4 * HID, PROJ), jnp.float32))
    params['lstm_whr'] = np.asarray(0.02 * jax.random.normal(k3, (PROJ, HID), jnp.float32))
    params['lstm_bih'] = np.asarray(0.02 * jax.random.normal(k4, (4 * HID,), jnp.float32))
    params['lstm_bhh'] = np.asarray(0.02 * jax.random.normal(k5, (4 * HID,), jnp.float32))
    return params, key


def make_data(key, seq_len, batch_size, nodes_per_graph, edges_per_graph):
    data = []
    for _ in range(seq_len):
        pos_l, x_l, b_l, s_l, d_l = [], [], [], [], []
        for b in range(batch_size):
            key, kp, kx, ks, kd = jax.random.split(key, 5)
            pos = np.asarray(jax.random.uniform(kp, (nodes_per_graph, 3), jnp.float32))
            feat = np.asarray(jnp.where(jax.random.uniform(kx, (nodes_per_graph, 1)) > 0.5,
                                        1.0, -1.0), np.float32)
            src = np.asarray(jax.random.randint(ks, (edges_per_graph,), 0, nodes_per_graph))
            dst = np.asarray(jax.random.randint(kd, (edges_per_graph,), 0, nodes_per_graph))
            off = b * nodes_per_graph
            pos_l.append(pos); x_l.append(feat)
            b_l.append(np.full(nodes_per_graph, b, np.int64))
            s_l.append(src + off); d_l.append(dst + off)
        pos = np.concatenate(pos_l); x = np.concatenate(x_l); batch = np.concatenate(b_l)
        ei = np.stack([np.concatenate(s_l), np.concatenate(d_l)]).astype(np.int64)
        cart = pos[ei[0]] - pos[ei[1]]
        ea = (cart / (2.0 * max(float(np.abs(cart).max()), 1e-12)) + 0.5).astype(np.float32)
        data.append(dict(x=x, pos=pos, batch=batch, edge_index=ei, edge_attr=ea))
    return data, key


if __name__ == "__main__":
    key = jax.random.PRNGKey(0)
    params, key = init_params(key)
    seq_len, batch_size = 4, 2
    data, key = make_data(key, seq_len, batch_size, nodes_per_graph=60, edges_per_graph=300)

    # backbone, all timesteps, layer-batched -> (seq, batch, 512)
    feats = backbone_forward_all(data, params, batch_size).astype(np.float32)

    # LSTM (input=512, hidden=512, proj_size=2), gates ordered [i, f, g, o]
    S_pad = ((seq_len + T_BLK - 1) // T_BLK) * T_BLK
    x_seq = np.zeros((S_pad, B_PAD, HID), np.float32)
    x_seq[:seq_len, :batch_size, :] = feats

    wih_bf16 = jnp.asarray(params['lstm_wih'].T.astype(np.float32)).astype(jnp.bfloat16)  # (512, 2048)
    whh_pad = np.zeros((B_PAD, 4 * HID), np.float32); whh_pad[:PROJ] = params['lstm_whh'].T
    whr_pad = np.zeros((HID, P_PAD), np.float32); whr_pad[:, :PROJ] = params['lstm_whr'].T
    bias = (params['lstm_bih'] + params['lstm_bhh']).reshape(1, 4 * HID).astype(np.float32)

    out_pad = lstm_forward(jnp.asarray(x_seq), wih_bf16, jnp.asarray(bias),
                           jnp.asarray(whh_pad), jnp.asarray(whr_pad))
    out_pad = jax.block_until_ready(out_pad)
    out = np.asarray(out_pad)[:seq_len, :batch_size, :PROJ]                 # (seq, batch, 2)

    assert out.shape == (seq_len, batch_size, 2) and np.all(np.isfinite(out))
    print("KERNEL_OK")
</pallas_src>

<mosaic_0001>
module attributes {stable_mosaic.version = 11 : i64} {
  func.func @_conv_elu_bn_kernel(%arg0: i32, %arg1: memref<4xi32, #tpu.memory_space<smem>>, %arg2: memref<1x128x128xf32, #tpu.memory_space<vmem>>, %arg3: memref<128x128xf32, #tpu.memory_space<vmem>>, %arg4: memref<1x128x1xf32, #tpu.memory_space<vmem>>, %arg5: memref<1x128xf32, #tpu.memory_space<vmem>>, %arg6: memref<1x128xf32, #tpu.memory_space<vmem>>, %arg7: memref<1x128x128xf32, #tpu.memory_space<vmem>>) attributes {dimension_semantics = [#tpu.dimension_semantics<parallel>], iteration_bounds = array<i64: 4>, scalar_prefetch = 1 : i64, scratch_operands = 0 : i64, tpu.core_type = #tpu.core_type<tc>, window_params = [{transform_indices = @transform_0, window_bounds = array<i64: 1, 128, 128>}, {pipeline_mode = #tpu.pipeline_mode<synchronous>, transform_indices = @transform_1, window_bounds = array<i64: 128, 128>}, {transform_indices = @transform_2, window_bounds = array<i64: 1, 128, 1>}, {pipeline_mode = #tpu.pipeline_mode<synchronous>, transform_indices = @transform_3, window_bounds = array<i64: 1, 128>}, {pipeline_mode = #tpu.pipeline_mode<synchronous>, transform_indices = @transform_4, window_bounds = array<i64: 1, 128>}, {transform_indices = @transform_5, window_bounds = array<i64: 1, 128, 128>}]} {
    %0 = arith.index_cast %arg0 : i32 to index
    %1 = memref.load %arg1[%0] : memref<4xi32, #tpu.memory_space<smem>>
    %c0 = arith.constant 0 : index
    %c0_0 = arith.constant 0 : index
    %c0_1 = arith.constant 0 : index
    %2 = vector.load %arg2[%c0, %c0_0, %c0_1] : memref<1x128x128xf32, #tpu.memory_space<vmem>>, vector<1x128x128xf32>
    %3 = vector.shape_cast %2 : vector<1x128x128xf32> to vector<128x128xf32>
    %c0_2 = arith.constant 0 : index
    %c0_3 = arith.constant 0 : index
    %4 = vector.load %arg3[%c0_2, %c0_3] : memref<128x128xf32, #tpu.memory_space<vmem>>, vector<128x128xf32>
    %cst = arith.constant dense<0.000000e+00> : vector<128x128xf32>
    %5 = tpu.matmul %3, %4, %cst {dimension_numbers = #tpu.dot_dimension_numbers<[1], [0], [0], [1], [0, 0, 1, 1], [], []>} : vector<128x128xf32>, vector<128x128xf32>, vector<128x128xf32> -> vector<128x128xf32>
    %c0_4 = arith.constant 0 : index
    %c0_5 = arith.constant 0 : index
    %c0_6 = arith.constant 0 : index
    %6 = vector.load %arg4[%c0_4, %c0_5, %c0_6] : memref<1x128x1xf32, #tpu.memory_space<vmem>>, vector<1x128x1xf32>
    %7 = vector.shape_cast %6 : vector<1x128x1xf32> to vector<128x1xf32>
    %8 = vector.broadcast %7 : vector<128x1xf32> to vector<128x128xf32>
    %9 = arith.mulf %5, %8 : vector<128x128xf32>
    %cst_7 = arith.constant 0.000000e+00 : f32
    %10 = vector.broadcast %cst_7 : f32 to vector<128x128xf32>
    %11 = arith.cmpf ogt, %9, %10 : vector<128x128xf32>
    %cst_8 = arith.constant 0.000000e+00 : f32
    %12 = vector.broadcast %cst_8 : f32 to vector<128x128xf32>
    %13 = arith.minimumf %9, %12 : vector<128x128xf32>
    %14 = math.exp %13 : vector<128x128xf32>
    %cst_9 = arith.constant 1.000000e+00 : f32
    %15 = vector.broadcast %cst_9 : f32 to vector<128x128xf32>
    %16 = arith.subf %14, %15 : vector<128x128xf32>
    %17 = arith.select %11, %9, %16 : vector<128x128xi1>, vector<128x128xf32>
    %18 = tpu.iota {dimensions = array<i32: 0>} : vector<128x128xi32>
    %19 = vector.broadcast %1 : i32 to vector<128x128xi32>
    %20 = arith.cmpi slt, %18, %19 : vector<128x128xi32>
    %21 = arith.extui %20 : vector<128x128xi1> to vector<128x128xi32>
    %22 = arith.sitofp %21 : vector<128x128xi32> to vector<128x128xf32>
    %23 = arith.sitofp %1 : i32 to f32
    %cst_10 = arith.constant 1.000000e+00 : f32
    %24 = arith.divf %cst_10, %23 : f32
    %25 = arith.mulf %17, %22 : vector<128x128xf32>
    %cst_11 = arith.constant dense<0.000000e+00> : vector<128xf32>
    %26 = vector.multi_reduction <add>, %25, %cst_11 [0] : vector<128x128xf32> to vector<128xf32>
    %27 = vector.shape_cast %26 : vector<128xf32> to vector<1x128xf32>
    %28 = vector.broadcast %24 : f32 to vector<1x128xf32>
    %29 = arith.mulf %27, %28 : vector<1x128xf32>
    %30 = vector.broadcast %29 : vector<1x128xf32> to vector<128x128xf32>
    %31 = arith.subf %17, %30 : vector<128x128xf32>
    %32 = arith.mulf %31, %22 : vector<128x128xf32>
    %33 = arith.mulf %32, %32 : vector<128x128xf32>
    %cst_12 = arith.constant dense<0.000000e+00> : vector<128xf32>
    %34 = vector.multi_reduction <add>, %33, %cst_12 [0] : vector<128x128xf32> to vector<128xf32>
    %35 = vector.shape_cast %34 : vector<128xf32> to vector<1x128xf32>
    %36 = vector.broadcast %24 : f32 to vector<1x128xf32>
    %37 = arith.mulf %35, %36 : vector<1x128xf32>
    %38 = vector.broadcast %29 : vector<1x128xf32> to vector<128x128xf32>
    %39 = arith.subf %17, %38 : vector<128x128xf32>
    %cst_13 = arith.constant 9.99999974E-6 : f32
    %40 = vector.broadcast %cst_13 : f32 to vector<1x128xf32>
    %41 = arith.addf %37, %40 : vector<1x128xf32>
    %42 = math.rsqrt %41 : vector<1x128xf32>
    %43 = vector.broadcast %42 : vector<1x128xf32> to vector<128x128xf32>
    %44 = arith.mulf %39, %43 : vector<128x128xf32>
    %c0_14 = arith.constant 0 : index
    %c0_15 = arith.constant 0 : index
    %45 = vector.load %arg5[%c0_14, %c0_15] : memref<1x128xf32, #tpu.memory_space<vmem>>, vector<1x128xf32>
    %46 = vector.broadcast %45 : vector<1x128xf32> to vector<128x128xf32>
    %47 = arith.mulf %44, %46 : vector<128x128xf32>
    %c0_16 = arith.constant 0 : index
    %c0_17 = arith.constant 0 : index
    %48 = vector.load %arg6[%c0_16, %c0_17] : memref<1x128xf32, #tpu.memory_space<vmem>>, vector<1x128xf32>
    %49 = vector.broadcast %48 : vector<1x128xf32> to vector<128x128xf32>
    %50 = arith.addf %47, %49 : vector<128x128xf32>
    %51 = arith.mulf %50, %22 : vector<128x128xf32>
    %c0_18 = arith.constant 0 : index
    %c0_19 = arith.constant 0 : index
    %c0_20 = arith.constant 0 : index
    %52 = vector.load %arg7[%c0_18, %c0_19, %c0_20] : memref<1x128x128xf32, #tpu.memory_space<vmem>>, vector<1x128x128xf32>
    %53 = vector.shape_cast %52 : vector<1x128x128xf32> to vector<128x128xf32>
    %54 = vector.shape_cast %51 : vector<128x128xf32> to vector<1x128x128xf32>
    tpu.vector_store %arg7[%c0_18, %c0_19, %c0_20], %54 {strides = array<i32>} : memref<1x128x128xf32, #tpu.memory_space<vmem>>, vector<1x128x128xf32>,
    return
  }
  func.func @transform_0(%arg0: i32, %arg1: memref<4xi32, #tpu.memory_space<smem>>) -> (i32, i32, i32) {
    %c0_i32 = arith.constant 0 : i32
    %c0_i32_0 = arith.constant 0 : i32
    %c0_i32_1 = arith.constant 0 : i32
    return %arg0, %c0_i32, %c0_i32_0 : i32, i32, i32
  }
  func.func @transform_1(%arg0: i32, %arg1: memref<4xi32, #tpu.memory_space<smem>>) -> (i32, i32) {
    %c0_i32 = arith.constant 0 : i32
    %c0_i32_0 = arith.constant 0 : i32
    %c0_i32_1 = arith.constant 0 : i32
    return %c0_i32, %c0_i32_0 : i32, i32
  }
  func.func @transform_2(%arg0: i32, %arg1: memref<4xi32, #tpu.memory_space<smem>>) -> (i32, i32, i32) {
    %c0_i32 = arith.constant 0 : i32
    %c0_i32_0 = arith.constant 0 : i32
    %c0_i32_1 = arith.constant 0 : i32
    return %arg0, %c0_i32, %c0_i32_0 : i32, i32, i32
  }
  func.func @transform_3(%arg0: i32, %arg1: memref<4xi32, #tpu.memory_space<smem>>) -> (i32, i32) {
    %c0_i32 = arith.constant 0 : i32
    %c0_i32_0 = arith.constant 0 : i32
    %c0_i32_1 = arith.constant 0 : i32
    return %c0_i32, %c0_i32_0 : i32, i32
  }
  func.func @transform_4(%arg0: i32, %arg1: memref<4xi32, #tpu.memory_space<smem>>) -> (i32, i32) {
    %c0_i32 = arith.constant 0 : i32
    %c0_i32_0 = arith.constant 0 : i32
    %c0_i32_1 = arith.constant 0 : i32
    return %c0_i32, %c0_i32_0 : i32, i32
  }
  func.func @transform_5(%arg0: i32, %arg1: memref<4xi32, #tpu.memory_space<smem>>) -> (i32, i32, i32) {
    %c0_i32 = arith.constant 0 : i32
    %c0_i32_0 = arith.constant 0 : i32
    %c0_i32_1 = arith.constant 0 : i32
    return %arg0, %c0_i32, %c0_i32_0 : i32, i32, i32
  }
}

</mosaic_0001>

<bundles_post_ra>
// kernel: conv_elu_bn_call.1
= control target key start
LH: loop header
LB: loop body
LE: loop exit
PB: predicated region body
PF: predicated region fallthrough
CT: control target
= control target key end

     0   :  { %s1985_s0 = inlined_call_operand.vmem [shape: s32[4], index: 0, kind: input, shape index: {}]   ;;  %s1986_s1 = inlined_call_operand.vmem [shape: f32[4,128,128], index: 1, kind: input, shape index: {}]   ;;  %s1987_s2 = inlined_call_operand.hbm [shape: f32[128,128], index: 2, kind: input, shape index: {}]   ;;  %s1988_s3 = inlined_call_operand.vmem [shape: f32[4,128,1], index: 3, kind: input, shape index: {}]   ;;  %s1989_s4 = inlined_call_operand.vmem [shape: f32[1,128], index: 4, kind: input, shape index: {}]   ;;  %s1990_s5 = inlined_call_operand.vmem [shape: f32[1,128], index: 5, kind: input, shape index: {}]   ;;  %s1991_s6 = inlined_call_operand.hbm [shape: f32[4,128,128], index: 6, kind: output, shape index: {}]  }
   0x1   :  { %s11_s23 = sshll.u32 %s1985_s0, 4  ;;  %s12_s23 = int_to_ptr.vmem [resolvable:$true] %s11_s23 }
   0x2   :  { %s1296_s24 = scalar_lea.vmem %s12_s23, 16  ;;  %p1301_p1 = scmp.lt.s32.totalorder %s12_s23, %s12_s23 }
   0x3   :  { %p1297_p0 = scmp.ne.s32.totalorder %s12_s23, %s1296_s24  ;;  %p1302_p2 = scmp.lt.s32.totalorder %s1296_s24, %s1296_s24 }
   0x5   :  { %p1303_p3 = por %p1302_p2, %p1301_p1 }
   0x7   :  { %p1304_p4 = pnand %p1303_p3, %p1297_p0 }
   0x9   :  { %1307 = shalt.err (!%p1304_p4)  }
   0xa   :  { %s1402_s25 = smov [#allocation3]  }
   0xb   :  { %14 = dma.vmem_to_smem %s12_s23, 16, %s1402_s25, [#allocation2] }
   0xc   :  { %1376 = dma.done.wait [#allocation2], 16 }
   0xd   :  { %1377 = vsyncadd [#allocation2], 4294967280 }
   0xe   :  { %16 = sfence }
   0xf   :  { %17 = vsyncpa [#allocation5], 0 }
  0x10   :  { %18 = vsyncpa [#allocation6], 0 }
  0x11   :  { %20 = vsyncpa [#allocation6 + $0x1], 0  ;;  %s1449_s26 = smov 0   ;;  %s1451_s27 = smov 0  }
  0x12   :  { %s1453_s0 = smov 0   ;;  %s1455_s28 = smov 0  }
  0x13 LB: > { %s1470_s29 = sadd.s32 4294967295, %s1400_s28   ;;  %s1026_s30 = sadd.s32 4294967294, %s1400_s28   ;;  %s1400_s28 = sphi %s1455_s28, %s1999_s28   ;;  %s1396_s0 = sphi %s1453_s0, %s1998_s0   ;;  %s1392_s27 = sphi %s1451_s27, %s1997_s27   ;;  %s1388_s26 = sphi %s1449_s26, %s1996_s26  }
  0x14   : > { %s1474_s7 = sadd.s32 1, %s1400_s28   ;;  %s148_s8 = sadd.s32 1, %s1396_s0 }
  0x15   : > { %s145_s9 = ssub.s32 %s1400_s28, %s1474_s7  ;;  %p158_p5 = scmp.ne.s32.totalorder %s1396_s0, %s1392_s27 }
  0x16   : > { %p146_p6 = scmp.eq.s32.totalorder %s145_s9, 0  ;;  %p159_p7 = scmp.eq.s32.totalorder %s1470_s29, 3 }
  0x17   : > { %p164_p8 = scmp.ne.s32.totalorder %s1392_s27, %s1388_s26  ;;  %p165_p9 = scmp.eq.s32.totalorder %s1026_s30, 3 }
  0x18   : > { %s1485_s10 = scalar_select %p146_p6, %s1396_s0, %s148_s8  }
  0x19   : > { %p1487_p10 = por %p159_p7, %p158_p5  ;;  %p1491_p11 = por %p165_p9, %p164_p8 }
  0x1a   : > { %p1027_p12 = scmp.ge.s32.totalorder %s1400_s28, 1  ;;  %p172_p13 = scmp.lt.s32.totalorder %s1400_s28, 5 }
  0x1b   : > { %s1993_s12 = scalar_select %p1491_p11, 1, 0 }
  0x1c   : > { %p1215_p0 = scmp.eq.s32.totalorder %s1470_s29, 0  ;;  %p1498_p1 = pnand %p1027_p12, %p172_p13 }
  0x1d   : > { %s1403_s14 = smov [#allocation4]  }
  0x1e   : > { %s184_s15 = sshll.u32 %s1403_s14, 4  ;;  %p1207_p2 = pneg %p1498_p1  ;;  %s185_s15 = int_to_ptr.vmem [resolvable:$true] %s184_s15 }
  0x1f   : > { %s1319_s16 = scalar_lea.vmem %s185_s15, 2048  ;;  %p1327_p8 = scmp.lt.s32.totalorder %s185_s15, %s185_s15 }
  0x20   : > { %p1208_p3 = pnand %p1215_p0, %p1207_p2  ;;  %p1320_p5 = scmp.ne.s32.totalorder %s185_s15, %s1319_s16 }
  0x21   : > { %p1328_p9 = scmp.lt.s32.totalorder %s1319_s16, %s1319_s16 }
  0x22   : > { %p1310_p4 = pneg %p1208_p3 }
  0x23   : > { %p1329_p11 = por %p1328_p9, %p1327_p8 }
  0x24   : > { %p1322_p6 = pnand %p1320_p5, %p1310_p4 }
  0x26   : > { %p1323_p7 = pneg %p1322_p6 }
  0x28   : > { %p1330_p12 = pnand %p1329_p11, %p1323_p7 }
  0x2a   : > { %1333 = shalt.err (!%p1330_p12)
}
  0x2b   : > { %s1404_s17 = smov 128   ;;  %s1405_s18 = smov 8  }
  0x2c   : > { %1210 = dma.hbm_to_vmem [thread:$0]  (!%p1208_p3), %s1987_s2, 2048, %s185_s15, [#allocation5], %s1404_s17, %s1404_s17, %s1405_s18  }
  0x2d   : > { %222 = sbr.rel (%p1498_p1) target bundleno = 454 (0x1c6), region = 40 }
  0x32   : > { %1379 = dma.done.wait (%p1215_p0), [#allocation5], 2048  }
  0x33   : > { %1381 = vsyncadd (%p1215_p0), [#allocation5], 4294965248  ;;  %v1406_v0 = vmov 0   ;;  %v297_v1 = vld [vmem:[#allocation4 + $0x78] sm:$0xff]  ;;  %v296_v2 = vld [vmem:[#allocation4 + $0x70] sm:$0xff]  ;;  %p255_p11 = scmp.lt.s32.totalorder %s1470_s29, 3 }
  0x34   : > { %1258 = vset.pattern.permute.xlu0 %v1406_v0  ;;  %1259 = vset.pattern.permute.xlu1 %v1406_v0  ;;  %v295_v3 = vld [vmem:[#allocation4 + $0x68] sm:$0xff]  ;;  %v294_v4 = vld [vmem:[#allocation4 + $0x60] sm:$0xff]  ;;  %v293_v5 = vld [vmem:[#allocation4 + $0x58] sm:$0xff]  ;;  %s1563_s13 = sld [smem:[#allocation3 + %s1470_s29]]  ;;  %s252_s18 = sand.u32 1, %s1392_s27  }
  0x35   : > { %1111 = vmatprep.subr.mxu0 %v297_v1  ;;  %1167 = vmatprep.subr.mxu1 %v297_v1  ;;  %v292_v6 = vld [vmem:[#allocation4 + $0x50] sm:$0xff]  ;;  %v291_v7 = vld [vmem:[#allocation4 + $0x48] sm:$0xff]  ;;  %v290_v8 = vld [vmem:[#allocation4 + $0x40] sm:$0xff]  ;;  %s1517_s21 = scalar_select %p255_p11, %s1470_s29, 3 }
  0x36   : > { %1112 = vmatpush3.msra.mxu0 %v297_v1  ;;  %1183 = vmatpush3.msra.mxu1 %v297_v1  ;;  %v289_v9 = vld [vmem:[#allocation4 + $0x38] sm:$0xff]  ;;  %v288_v10 = vld [vmem:[#allocation4 + $0x30] sm:$0xff]  ;;  %v287_v11 = vld [vmem:[#allocation4 + $0x28] sm:$0xff]  ;;  %s1894_s19 = sshll.u32 %s252_s18, 7  ;;  %s1945_s8 = scalar_lea.sflag [#allocation6], %s252_s18 }
  0x37   : > { %1113 = vmatprep.subr.mxu0 %v296_v2  ;;  %1168 = vmatprep.subr.mxu1 %v296_v2  ;;  %v286_v12 = vld [vmem:[#allocation4 + $0x20] sm:$0xff]  ;;  %v285_v13 = vld [vmem:[#allocation4 + $0x18] sm:$0xff]  ;;  %v284_v14 = vld [vmem:[#allocation4 + $0x10] sm:$0xff]  ;;  %s1076_s22 = sshll.u32 %s1517_s21, 7  ;;  %s1901_s23 = scalar_lea.vmem [#allocation7], %s1894_s19 }
  0x38   : > { %1114 = vmatpush3.msra.mxu0 %v296_v2  ;;  %1184 = vmatpush3.msra.mxu1 %v296_v2  ;;  %v283_v15 = vld [vmem:[#allocation4 + $0x8] sm:$0xff]  ;;  %s1523_s25 = scalar_lea.vmem %s1986_s1, %s1076_s22  ;;  %v282_v16 = vld [vmem:[#allocation4] sm:$0xff]  ;;  %s1530_s9 = scalar_lea.vmem %s1988_s3, %s1076_s22  ;;  %v651_v2 = vlaneseq }
  0x39   : > { %1115 = vmatprep.subr.mxu0 %v295_v3  ;;  %1169 = vmatprep.subr.mxu1 %v295_v3  ;;  %v266_v17 = vld [vmem:[%s1523_s25] sm:$0xff]  ;;  %v267_v19 = vld [vmem:[%s1523_s25 + $0x8] sm:$0xff]  ;;  %v268_v21 = vld [vmem:[%s1523_s25 + $0x10] sm:$0xff]  ;;  %s1078_s22 = sshll.u32 %s1470_s29, 11  ;;  %s940_s24 = sshll.u32 %s1901_s23, 4  ;;  %s1925_s24 = int_to_ptr.vmem [resolvable:$true] %s940_s24 }
  0x3a   : > { %1116 = vmatpush3.msra.mxu0 %v295_v3  ;;  %1185 = vmatpush3.msra.mxu1 %v295_v3  ;;  %v274_v18 = vld [vmem:[%s1523_s25 + $0x40] sm:$0xff]  ;;  %v275_v20 = vld [vmem:[%s1523_s25 + $0x48] sm:$0xff]  ;;  %v276_v22 = vld [vmem:[%s1523_s25 + $0x50] sm:$0xff]  ;;  %s717_s14 = scvt.s32.f32 %s1563_s13  ;;  %s1923_s30 = scalar_lea.hbm %s1991_s6, %s1078_s22 }
  0x3b   : > { %1117 = vmatprep.subr.mxu0 %v294_v4  ;;  %1170 = vmatprep.subr.mxu1 %v294_v4  ;;  %v443_v23 = vld [vmem:[%s1530_s9] sm:$0xff]  ;;  %v445_v24 = vld [vmem:[%s1530_s9 + $0x10] sm:$0xff]  ;;  %v269_v25 = vld [vmem:[%s1523_s25 + $0x18] sm:$0xff] }
  0x3c   : > { %1118 = vmatpush3.msra.mxu0 %v294_v4  ;;  %1186 = vmatpush3.msra.mxu1 %v294_v4  ;;  %v277_v26 = vld [vmem:[%s1523_s25 + $0x58] sm:$0xff]  ;;  %v270_v27 = vld [vmem:[%s1523_s25 + $0x20] sm:$0xff]  ;;  %v444_v29 = vld [vmem:[%s1530_s9 + $0x8] sm:$0xff]  ;;  %v718_v49 = vstv %s717_s14 }
  0x3d   : > { %1119 = vmatprep.subr.mxu0 %v293_v5  ;;  %1171 = vmatprep.subr.mxu1 %v293_v5  ;;  %v278_v28 = vld [vmem:[%s1523_s25 + $0x60] sm:$0xff]  ;;  %v446_v30 = vld [vmem:[%s1530_s9 + $0x18] sm:$0xff]  ;;  %v271_v31 = vld [vmem:[%s1523_s25 + $0x28] sm:$0xff]  ;;  %1260 = vrcp.f32 %v718_v49 }
  0x3e   : > { %1120 = vmatpush3.msra.mxu0 %v293_v5  ;;  %1187 = vmatpush3.msra.mxu1 %v293_v5  ;;  %v279_v32 = vld [vmem:[%s1523_s25 + $0x68] sm:$0xff]  ;;  %v272_v33 = vld [vmem:[%s1523_s25 + $0x30] sm:$0xff]  ;;  %v447_v35 = vld [vmem:[%s1530_s9 + $0x20] sm:$0xff] }
  0x3f   : > { %1121 = vmatprep.subr.mxu0 %v292_v6  ;;  %1172 = vmatprep.subr.mxu1 %v292_v6  ;;  %v280_v34 = vld [vmem:[%s1523_s25 + $0x70] sm:$0xff]  ;;  %v448_v36 = vld [vmem:[%s1530_s9 + $0x28] sm:$0xff]  ;;  %v273_v37 = vld [vmem:[%s1523_s25 + $0x38] sm:$0xff] }
  0x40   : > { %1122 = vmatpush3.msra.mxu0 %v292_v6  ;;  %1188 = vmatpush3.msra.mxu1 %v292_v6  ;;  %v281_v38 = vld [vmem:[%s1523_s25 + $0x78] sm:$0xff]  ;;  %v449_v39 = vld [vmem:[%s1530_s9 + $0x30] sm:$0xff]  ;;  %v451_v41 = vld [vmem:[%s1530_s9 + $0x40] sm:$0xff] }
  0x41   : > { %1123 = vmatprep.subr.mxu0 %v291_v7  ;;  %1173 = vmatprep.subr.mxu1 %v291_v7  ;;  %v450_v40 = vld [vmem:[%s1530_s9 + $0x38] sm:$0xff]  ;;  %v452_v42 = vld [vmem:[%s1530_s9 + $0x48] sm:$0xff]  ;;  %v453_v43 = vld [vmem:[%s1530_s9 + $0x50] sm:$0xff] }
  0x42   : > { %1124 = vmatpush3.msra.mxu0 %v291_v7  ;;  %1189 = vmatpush3.msra.mxu1 %v291_v7  ;;  %v454_v44 = vld [vmem:[%s1530_s9 + $0x58] sm:$0xff]  ;;  %v455_v45 = vld [vmem:[%s1530_s9 + $0x60] sm:$0xff]  ;;  %v456_v46 = vld [vmem:[%s1530_s9 + $0x68] sm:$0xff] }
  0x43   : > { %1125 = vmatprep.subr.mxu0 %v290_v8  ;;  %1174 = vmatprep.subr.mxu1 %v290_v8  ;;  %v457_v47 = vld [vmem:[%s1530_s9 + $0x70] sm:$0xff]  ;;  %v458_v48 = vld [vmem:[%s1530_s9 + $0x78] sm:$0xff]  ;;  %s1334_s9 = scalar_lea.vmem %s1925_s24, 2048 }
  0x44   : > { %1126 = vmatpush3.msra.mxu0 %v290_v8  ;;  %1190 = vmatpush3.msra.mxu1 %v290_v8  ;;  %p1335_p13 = scmp.ne.s32.totalorder %s1925_s24, %s1334_s9 }
  0x45   : > { %1127 = vmatprep.subr.mxu0 %v289_v9  ;;  %1175 = vmatprep.subr.mxu1 %v289_v9 }
  0x46   : > { %1128 = vmatpush3.msra.mxu0 %v289_v9  ;;  %1191 = vmatpush3.msra.mxu1 %v289_v9  ;;  %p1336_p0 = pnand %p1335_p13, %p1487_p10 }
  0x47   : > { %1129 = vmatprep.subr.mxu0 %v288_v10  ;;  %1176 = vmatprep.subr.mxu1 %v288_v10 }
  0x48   : > { %1130 = vmatpush3.msra.mxu0 %v288_v10  ;;  %1192 = vmatpush3.msra.mxu1 %v288_v10  ;;  %p1337_p1 = pneg %p1336_p0 }
  0x49   : > { %1131 = vmatprep.subr.mxu0 %v287_v11  ;;  %1177 = vmatprep.subr.mxu1 %v287_v11 }
  0x4a   : > { %1132 = vmatpush3.msra.mxu0 %v287_v11  ;;  %1193 = vmatpush3.msra.mxu1 %v287_v11  ;;  %v1261_v50 = vpop.eup %1260 }
  0x4b   : > { %1133 = vmatprep.subr.mxu0 %v286_v12  ;;  %1178 = vmatprep.subr.mxu1 %v286_v12  ;;  %1199 = vpush %v1261_v50 }
  0x4c   : > { %1134 = vmatpush3.msra.mxu0 %v286_v12  ;;  %1194 = vmatpush3.msra.mxu1 %v286_v12  ;;  %v1576_v12 = vshrl.u32 %v651_v2, 7 }
  0x4d   : > { %1135 = vmatprep.subr.mxu0 %v285_v13  ;;  %1179 = vmatprep.subr.mxu1 %v285_v13 }
  0x4e   : > { %1136 = vmatpush3.msra.mxu0 %v285_v13  ;;  %1195 = vmatpush3.msra.mxu1 %v285_v13 }
  0x4f   : > { %1137 = vmatprep.subr.mxu0 %v284_v14  ;;  %1180 = vmatprep.subr.mxu1 %v284_v14 }
  0x50   : > { %1138 = vmatpush3.msra.mxu0 %v284_v14  ;;  %1196 = vmatpush3.msra.mxu1 %v284_v14 }
  0x51   : > { %1139 = vmatprep.subr.mxu0 %v283_v15  ;;  %1181 = vmatprep.subr.mxu1 %v283_v15 }
  0x52   : > { %1140 = vmatpush3.msra.mxu0 %v283_v15  ;;  %1197 = vmatpush3.msra.mxu1 %v283_v15 }
  0x53   : > { %1141 = vmatprep.subr.mxu0 %v282_v16  ;;  %1182 = vmatprep.subr.mxu1 %v282_v16 }
  0x54   : > { %1142 = vmatpush3.msra.mxu0 %v282_v16  ;;  %1198 = vmatpush3.msra.mxu1 %v282_v16 }
  0x55   : > { %1143 = vmatprep.mubr.f32.mxu0 %v266_v17  ;;  %1155 = vmatprep.mubr.f32.mxu1 %v274_v18 }
  0x56   : > { %1144 = vmatmul.mubr.f32.vlgmr.msra.gmra.mxu0 %v267_v19  ;;  %1156 = vmatmul.mubr.f32.vlgmr.msra.gmra.mxu1 %v275_v20 }
  0x57   : > { %1146 = vmatprep.mubr.f32.mxu0 %v268_v21  ;;  %1158 = vmatprep.mubr.f32.mxu1 %v276_v22 }
  0x58   : > { %461 = vperm.xlu0 %1258, %v443_v23   ;;  %471 = vperm.xlu1 %1259, %v445_v24   ;;  %v653_v24 = vadd.s32 8, %v1576_v12 }
  0x5a   : > { %1147 = vmatmul.mubr.f32.gmra.mxu0 %v269_v25  ;;  %1159 = vmatmul.mubr.f32.gmra.mxu1 %v277_v26  ;;  %v1588_v26 = vstv %s1563_s13  ;;  %s1408_s13 = smov [#allocation7]  }
  0x5b   : > { %1149 = vmatprep.mubr.f32.mxu0 %v270_v27  ;;  %1161 = vmatprep.mubr.f32.mxu1 %v278_v28  ;;  %vm670_vm0 = vcmp.lt.s32.totalorder %v653_v24, %v1588_v26  ;;  %vm669_vm1 = vcmp.lt.s32.totalorder %v1576_v12, %v1588_v26  ;;  %s1338_s14 = sshll.u32 %s1408_s13, 4  ;;  %s1339_s14 = int_to_ptr.vmem [resolvable:$false] %s1338_s14 }
  0x5c   : > { %466 = vperm.xlu0 %1258, %v444_v29   ;;  %476 = vperm.xlu1 %1259, %v446_v30   ;;  %p1341_p2 = scmp.lt.s32.totalorder %s1925_s24, %s1339_s14 }
  0x5e   : > { %1150 = vmatmul.mubr.f32.gmra.mxu0 %v271_v31  ;;  %1162 = vmatmul.mubr.f32.gmra.mxu1 %v279_v32 }
  0x5f   : > { %1152 = vmatprep.mubr.f32.mxu0 %v272_v33  ;;  %1164 = vmatprep.mubr.f32.mxu1 %v280_v34 }
  0x60   : > { %481 = vperm.xlu0 %1258, %v447_v35   ;;  %486 = vperm.xlu1 %1259, %v448_v36  }
  0x62   : > { %1153 = vmatmul.mubr.f32.gmra.mxu0 %v273_v37  ;;  %1165 = vmatmul.mubr.f32.gmra.mxu1 %v281_v38 }
  0x64   : > { %491 = vperm.xlu0 %1258, %v449_v39   ;;  %496 = vperm.xlu1 %1259, %v450_v40  }
  0x68   : > { %501 = vperm.xlu0 %1258, %v451_v41   ;;  %506 = vperm.xlu1 %1259, %v452_v42  }
  0x6c   : > { %511 = vperm.xlu0 %1258, %v453_v43   ;;  %516 = vperm.xlu1 %1259, %v454_v44  }
  0x70   : > { %521 = vperm.xlu0 %1258, %v455_v45   ;;  %526 = vperm.xlu1 %1259, %v456_v46   ;;  %v655_v46 = vadd.s32 24, %v1576_v12 }
  0x72   : > { %vm672_vm2 = vcmp.lt.s32.totalorder %v655_v46, %v1588_v26 }
  0x74   : > { %531 = vperm.xlu0 %1258, %v457_v47   ;;  %536 = vperm.xlu1 %1259, %v458_v48   ;;  %v654_v47 = vadd.s32 16, %v1576_v12 }
  0x76   : > { %vm671_vm3 = vcmp.lt.s32.totalorder %v654_v47, %v1588_v26  ;;  %v659_v47 = vadd.s32 56, %v1576_v12 }
  0x78   : > { %vm676_vm13 = vcmp.lt.s32.totalorder %v659_v47, %v1588_v26 }
  0x7c   : > { %s1813_s15 = spop %1199 }
  0xd3   : > { %v462_v51 = vpop.permute.xlu0 %461  ;;  %v472_v52 = vpop.permute.xlu1 %471 }
  0xd7   : > { %v467_v53 = vpop.permute.xlu0 %466  ;;  %v477_v54 = vpop.permute.xlu1 %476 }
  0xdb   : > { %v482_v55 = vpop.permute.xlu0 %481  ;;  %v487_v56 = vpop.permute.xlu1 %486 }
  0xdf   : > { %v1566_v57 = vpop.permute.xlu0 %491  ;;  %v497_v58 = vpop.permute.xlu1 %496 }
  0xe3   : > { %v502_v0 = vpop.permute.xlu0 %501  ;;  %v507_v6 = vpop.permute.xlu1 %506 }
  0xe7   : > { %v512_v17 = vpop.permute.xlu0 %511  ;;  %v517_v23 = vpop.permute.xlu1 %516 }
  0xeb   : > { %v522_v36 = vpop.permute.xlu0 %521  ;;  %v527_v45 = vpop.permute.xlu1 %526 }
 0x116   : > { %v1145_v59 = vpop.f32.mrf.mxu0  ;;  %v1157_v60 = vpop.f32.mrf.mxu1 }
 0x117   : > { %v1568_v61 = vmul.f32 %v1145_v59, %v467_v53  ;;  %v1590_v27 = vmul.f32 %v1157_v60, %v507_v6 }
 0x118   : > { %v364_v62 = vpop.f32.mrf.mxu0  ;;  %v404_v63 = vpop.f32.mrf.mxu1 }
 0x119   : > { %v572_v1 = vmin.f32 %v1568_v61, 0.0  ;;  %v1571_v3 = vmul.f32 %v462_v51, %v364_v62  ;;  %v1579_v18 = vmul.f32 %v502_v0, %v404_v63  ;;  %v580_v38 = vmin.f32 %v1590_v27, 0.0  ;;  %v532_v63 = vpop.permute.xlu0 %531 }
 0x11a   : > { %v1148_v4 = vpop.f32.mrf.mxu0  ;;  %v1160_v5 = vpop.f32.mrf.mxu1  ;;  %vm556_vm5 = vcmp.gt.f32.partialorder %v1568_v61, 0.0 }
 0x11b   : > { %v589_v7 = vmul.f32 1.442695, %v572_v1  ;;  %v1573_v8 = vmul.f32 %v1148_v4, %v477_v54  ;;  %v571_v9 = vmin.f32 %v1571_v3, 0.0  ;;  %v579_v31 = vmin.f32 %v1579_v18, 0.0 }
 0x11c   : > { %v374_v10 = vpop.f32.mrf.mxu0  ;;  %v414_v11 = vpop.f32.mrf.mxu1  ;;  %v1605_v43 = vmul.f32 %v1160_v5, %v517_v23  ;;  %v1407_v54 = vmov 0.0   ;;  %vm555_vm4 = vcmp.gt.f32.partialorder %v1571_v3, 0.0 }
 0x11d   : > { %1262 = vpow2.f32 %v589_v7  ;;  %v574_v13 = vmin.f32 %v1573_v8, 0.0  ;;  %v587_v14 = vmul.f32 1.442695, %v571_v9  ;;  %v1581_v20 = vmul.f32 %v472_v52, %v374_v10  ;;  %v537_v9 = vpop.permute.xlu1 %536 }
 0x11e   : > { %v1151_v15 = vpop.f32.mrf.mxu0  ;;  %v1163_v16 = vpop.f32.mrf.mxu1  ;;  %v1594_v33 = vmul.f32 %v512_v17, %v414_v11  ;;  %v603_v42 = vmul.f32 1.442695, %v579_v31  ;;  %v656_v10 = vadd.s32 32, %v1576_v12  ;;  %v1648_v17 = vsel %vm672_vm2, 1.0, %v1407_v54 }
 0x11f   : > { %v593_v19 = vmul.f32 1.442695, %v574_v13  ;;  %v1583_v21 = vmul.f32 %v1151_v15, %v487_v56  ;;  %1264 = vpow2.f32 %v587_v14  ;;  %v573_v25 = vmin.f32 %v1581_v20, 0.0 }
 0x120   : > { %v384_v22 = vpop.f32.mrf.mxu0  ;;  %v424_v29 = vpop.f32.mrf.mxu1  ;;  %v581_v48 = vmin.f32 %v1594_v33, 0.0  ;;  %v605_v56 = vmul.f32 1.442695, %v580_v38  ;;  %v1628_v60 = vmul.f32 %v1163_v16, %v527_v45  ;;  %vm673_vm6 = vcmp.lt.s32.totalorder %v656_v10, %v1588_v26 }
 0x121   : > { %1266 = vpow2.f32 %v593_v19  ;;  %v576_v28 = vmin.f32 %v1583_v21, 0.0  ;;  %v591_v32 = vmul.f32 1.442695, %v573_v25  ;;  %v1596_v35 = vmul.f32 %v482_v55, %v384_v22 }
 0x122   : > { %v1154_v30 = vpop.f32.mrf.mxu0  ;;  %v1166_v40 = vpop.f32.mrf.mxu1  ;;  %v1611_v50 = vmul.f32 %v522_v36, %v424_v29  ;;  %v1619_v55 = vsel %vm670_vm0, 1.0, %v1407_v54  ;;  %v607_v0 = vmul.f32 1.442695, %v581_v48  ;;  %v584_v14 = vmin.f32 %v1628_v60, 0.0 }
 0x123   : > { %v597_v34 = vmul.f32 1.442695, %v576_v28  ;;  %1268 = vpow2.f32 %v591_v32  ;;  %v1599_v37 = vmul.f32 %v1154_v30, %v497_v58  ;;  %v575_v39 = vmin.f32 %v1596_v35, 0.0 }
 0x124   : > { %v394_v41 = vpop.f32.mrf.mxu0  ;;  %v1625_v58 = vsel %vm669_vm1, 1.0, %v1407_v54  ;;  %v434_v59 = vpop.f32.mrf.mxu1  ;;  %v583_v4 = vmin.f32 %v1611_v50, 0.0  ;;  %v1639_v15 = vmul.f32 %v1166_v40, %v537_v9  ;;  %v657_v29 = vadd.s32 40, %v1576_v12 }
 0x125   : > { %1270 = vpow2.f32 %v597_v34  ;;  %v578_v44 = vmin.f32 %v1599_v37, 0.0  ;;  %v595_v49 = vmul.f32 1.442695, %v575_v39  ;;  %v1614_v52 = vmul.f32 %v1566_v57, %v394_v41 }
 0x126   : > { %v582_v57 = vmin.f32 %v1605_v43, 0.0  ;;  %v1634_v6 = vmul.f32 %v532_v63, %v434_v59  ;;  %v611_v23 = vmul.f32 1.442695, %v583_v4  ;;  %v613_v30 = vmul.f32 1.442695, %v584_v14 }
 0x127   : > { %v601_v51 = vmul.f32 1.442695, %v578_v44  ;;  %1272 = vpow2.f32 %v595_v49  ;;  %v577_v62 = vmin.f32 %v1614_v52, 0.0  ;;  %v586_v31 = vmin.f32 %v1639_v15, 0.0 }
 0x128   : > { %1274 = vpow2.f32 %v603_v42  ;;  %v609_v13 = vmul.f32 1.442695, %v582_v57  ;;  %v585_v24 = vmin.f32 %v1634_v6, 0.0  ;;  %vm558_vm7 = vcmp.gt.f32.partialorder %v1573_v8, 0.0 }
 0x129   : > { %1276 = vpow2.f32 %v601_v51  ;;  %v599_v5 = vmul.f32 1.442695, %v577_v62  ;;  %vm557_vm8 = vcmp.gt.f32.partialorder %v1581_v20, 0.0  ;;  %v658_v36 = vadd.s32 48, %v1576_v12 }
 0x12a   : > { %v1263_v53 = vpop.eup %1262  ;;  %1278 = vpow2.f32 %v605_v56  ;;  %v615_v40 = vmul.f32 1.442695, %v585_v24  ;;  %v660_v42 = vadd.s32 64, %v1576_v12  ;;  %vm674_vm9 = vcmp.lt.s32.totalorder %v657_v29, %v1588_v26 }
 0x12b   : > { %v1038_v2 = vadd.f32 -1.0, %v1263_v53  ;;  %1280 = vpow2.f32 %v599_v5  ;;  %v1685_v53 = vsel %vm673_vm6, 1.0, %v1407_v54  ;;  %vm560_vm10 = vcmp.gt.f32.partialorder %v1583_v21, 0.0 }
 0x12c   : > { %v1265_v1 = vpop.eup %1264  ;;  %1282 = vpow2.f32 %v607_v0  ;;  %vm559_vm11 = vcmp.gt.f32.partialorder %v1596_v35, 0.0  ;;  %vm675_vm12 = vcmp.lt.s32.totalorder %v658_v36, %v1588_v26  ;;  %v1694_v57 = vsel %vm674_vm9, 1.0, %v1407_v54 }
 0x12d   : > { %v1037_v7 = vadd.f32 -1.0, %v1265_v1  ;;  %v1651_v19 = vsel %vm556_vm5, %v1568_v61, %v1038_v2  ;;  %1284 = vpow2.f32 %v609_v13  ;;  %v661_v5 = vadd.s32 72, %v1576_v12 }
 0x12e   : > { %v1267_v11 = vpop.eup %1266  ;;  %v722_v34 = vmul.f32 %v1619_v55, %v1651_v19  ;;  %1286 = vpow2.f32 %v611_v23  ;;  %vm677_vm14 = vcmp.lt.s32.totalorder %v660_v42, %v1588_v26  ;;  %v662_v13 = vadd.s32 80, %v1576_v12 }
 0x12f   : > { %v1643_v16 = vsel %vm555_vm4, %v1571_v3, %v1037_v7  ;;  %v1040_v22 = vadd.f32 -1.0, %v1267_v11  ;;  %v1659_v3 = vsel %vm671_vm3, 1.0, %v1407_v54  ;;  %1288 = vpow2.f32 %v613_v30 }
 0x130   : > { %v1269_v25 = vpop.eup %1268  ;;  %v721_v28 = vmul.f32 %v1625_v58, %v1643_v16  ;;  %1290 = vpow2.f32 %v615_v40  ;;  %vm562_vm15 = vcmp.gt.f32.partialorder %v1599_v37, 0.0  ;;  %v1712_v14 = vsel %vm676_vm13, 1.0, %v1407_v54 }
 0x131   : > { %v1039_v61 = vadd.f32 -1.0, %v1269_v25  ;;  %v1670_v38 = vsel %vm558_vm7, %v1573_v8, %v1040_v22  ;;  %v617_v8 = vmul.f32 1.442695, %v586_v31  ;;  %vm561_vm0 = vcmp.gt.f32.partialorder %v1614_v52, 0.0 }
 0x132   : > { %v1271_v32 = vpop.eup %1270  ;;  %v737_v41 = vadd.f32 %v722_v34, %v721_v28  ;;  %vm678_vm1 = vcmp.lt.s32.totalorder %v661_v5, %v1588_v26  ;;  %vm563_vm2 = vcmp.gt.f32.partialorder %v1579_v18, 0.0  ;;  %v663_v29 = vadd.s32 88, %v1576_v12 }
 0x133   : > { %v1673_v39 = vsel %vm557_vm8, %v1581_v20, %v1039_v61  ;;  %v1042_v45 = vadd.f32 -1.0, %v1271_v32  ;;  %v724_v20 = vmul.f32 %v1648_v17, %v1670_v38  ;;  %1292 = vpow2.f32 %v617_v8 }
 0x134   : > { %v723_v44 = vmul.f32 %v1659_v3, %v1673_v39  ;;  %v1273_v46 = vpop.eup %1272  ;;  %v664_v31 = vadd.s32 96, %v1576_v12  ;;  %vm564_vm3 = vcmp.gt.f32.partialorder %v1590_v27, 0.0  ;;  %vm679_vm4 = vcmp.lt.s32.totalorder %v662_v13, %v1588_v26 }
 0x135   : > { %v1275_v48 = vpop.eup %1274  ;;  %v1041_v51 = vadd.f32 -1.0, %v1273_v46  ;;  %v1691_v59 = vsel %vm560_vm10, %v1583_v21, %v1042_v45  ;;  %v1705_v21 = vsel %vm675_vm12, 1.0, %v1407_v54  ;;  %v1743_v40 = vsel %vm678_vm1, 1.0, %v1407_v54 }
 0x136   : > { %v738_v49 = vadd.f32 %v737_v41, %v723_v44  ;;  %v1277_v56 = vpop.eup %1276  ;;  %v726_v9 = vmul.f32 %v1694_v57, %v1691_v59  ;;  %v665_v42 = vadd.s32 104, %v1576_v12  ;;  %vm680_vm5 = vcmp.lt.s32.totalorder %v663_v29, %v1588_v26 }
 0x137   : > { %v1697_v62 = vsel %vm559_vm11, %v1596_v35, %v1041_v51  ;;  %v1279_v0 = vpop.eup %1278  ;;  %v1044_v2 = vadd.f32 -1.0, %v1277_v56  ;;  %v1045_v35 = vadd.f32 -1.0, %v1275_v48  ;;  %vm565_vm6 = vcmp.gt.f32.partialorder %v1594_v33, 0.0 }
 0x138   : > { %v739_v63 = vadd.f32 %v738_v49, %v724_v20  ;;  %v725_v1 = vmul.f32 %v1685_v53, %v1697_v62  ;;  %v1281_v4 = vpop.eup %1280  ;;  %v1046_v22 = vadd.f32 -1.0, %v1279_v0  ;;  %vm681_vm7 = vcmp.lt.s32.totalorder %v664_v31, %v1588_v26 }
 0x139   : > { %v1283_v7 = vpop.eup %1282  ;;  %v1043_v11 = vadd.f32 -1.0, %v1281_v4  ;;  %v1716_v23 = vsel %vm562_vm15, %v1599_v37, %v1044_v2  ;;  %v1727_v30 = vsel %vm563_vm2, %v1579_v18, %v1045_v35  ;;  %v1732_v37 = vsel %vm677_vm14, 1.0, %v1407_v54 }
 0x13a   : > { %v740_v10 = vadd.f32 %v739_v63, %v725_v1  ;;  %v1285_v28 = vpop.eup %1284  ;;  %v728_v34 = vmul.f32 %v1712_v14, %v1716_v23  ;;  %v1740_v18 = vsel %vm564_vm3, %v1590_v27, %v1046_v22  ;;  %v729_v45 = vmul.f32 %v1732_v37, %v1727_v30 }
 0x13b   : > { %v1719_v24 = vsel %vm561_vm0, %v1614_v52, %v1043_v11  ;;  %v1047_v52 = vadd.f32 -1.0, %v1283_v7  ;;  %v1287_v32 = vpop.eup %1286  ;;  %v1048_v41 = vadd.f32 -1.0, %v1285_v28  ;;  %v1754_v27 = vsel %vm679_vm4, 1.0, %v1407_v54 }
 0x13c   : > { %v741_v25 = vadd.f32 %v740_v10, %v726_v9  ;;  %v727_v61 = vmul.f32 %v1705_v21, %v1719_v24  ;;  %v1289_v44 = vpop.eup %1288  ;;  %v1049_v8 = vadd.f32 -1.0, %v1287_v32  ;;  %v730_v20 = vmul.f32 %v1743_v40, %v1740_v18 }
 0x13d   : > { %v1751_v47 = vsel %vm565_vm6, %v1594_v33, %v1047_v52  ;;  %v1291_v48 = vpop.eup %1290  ;;  %vm566_vm8 = vcmp.gt.f32.partialorder %v1605_v43, 0.0  ;;  %v666_v51 = vadd.s32 112, %v1576_v12  ;;  %v1765_v33 = vsel %vm680_vm5, 1.0, %v1407_v54 }
 0x13e   : > { %v742_v36 = vadd.f32 %v741_v25, %v727_v61  ;;  %v1762_v56 = vsel %vm566_vm8, %v1605_v43, %v1048_v41  ;;  %v1050_v63 = vadd.f32 -1.0, %v1289_v44  ;;  %vm682_vm9 = vcmp.lt.s32.totalorder %v665_v42, %v1588_v26 }
 0x13f   : > { %v731_v1 = vmul.f32 %v1754_v27, %v1751_v47  ;;  %vm567_vm10 = vcmp.gt.f32.partialorder %v1611_v50, 0.0  ;;  %v667_v2 = vadd.s32 120, %v1576_v12  ;;  %v1778_v43 = vsel %vm681_vm7, 1.0, %v1407_v54 }
 0x140   : > { %v743_v46 = vadd.f32 %v742_v36, %v728_v34  ;;  %v1293_v0 = vpop.eup %1292  ;;  %v1773_v5 = vsel %vm567_vm10, %v1611_v50, %v1049_v8  ;;  %v1051_v7 = vadd.f32 -1.0, %v1291_v48  ;;  %v732_v35 = vmul.f32 %v1765_v33, %v1762_v56 }
 0x141   : > { %vm568_vm11 = vcmp.gt.f32.partialorder %v1628_v60, 0.0  ;;  %vm683_vm12 = vcmp.lt.s32.totalorder %v666_v51, %v1588_v26  ;;  %v1788_v50 = vsel %vm682_vm9, 1.0, %v1407_v54  ;;  %v1052_v10 = vadd.f32 -1.0, %v1293_v0 }
 0x142   : > { %v744_v49 = vadd.f32 %v743_v46, %v729_v45  ;;  %v1785_v12 = vsel %vm568_vm11, %v1628_v60, %v1050_v63  ;;  %v733_v11 = vmul.f32 %v1778_v43, %v1773_v5  ;;  %vm684_vm13 = vcmp.lt.s32.totalorder %v667_v2, %v1588_v26 }
 0x143   : > { %vm569_vm14 = vcmp.gt.f32.partialorder %v1634_v6, 0.0  ;;  %v1798_v25 = vsel %vm683_vm12, 1.0, %v1407_v54  ;;  %v734_v60 = vmul.f32 %v1788_v50, %v1785_v12  ;;  %vm570_vm15 = vcmp.gt.f32.partialorder %v1639_v15, 0.0 }
 0x144   : > { %v745_v4 = vadd.f32 %v744_v49, %v730_v20  ;;  %v1795_v22 = vsel %vm569_vm14, %v1634_v6, %v1051_v7  ;;  %v1804_v29 = vsel %vm570_vm15, %v1639_v15, %v1052_v10  ;;  %v1807_v26 = vsel %vm684_vm13, 1.0, %v1407_v54 }
 0x145   : > { %v735_v61 = vmul.f32 %v1798_v25, %v1795_v22  ;;  %v736_v52 = vmul.f32 %v1807_v26, %v1804_v29  ;;  %v758_v54 = vstv %s1813_s15  ;;  %s1340_s15 = scalar_lea.vmem %s1339_s14, 4096 }
 0x146   : > { %v746_v9 = vadd.f32 %v745_v4, %v731_v1  ;;  %p1342_p3 = scmp.lt.s32.totalorder %s1340_s15, %s1334_s9 }
 0x148   : > { %v747_v13 = vadd.f32 %v746_v9, %v732_v35  ;;  %p1343_p4 = por %p1342_p3, %p1341_p2 }
 0x14a   : > { %v748_v28 = vadd.f32 %v747_v13, %v733_v11  ;;  %p1344_p5 = pnand %p1343_p4, %p1337_p1 }
 0x14c   : > { %v749_v6 = vadd.f32 %v748_v28, %v734_v60 }
 0x14e   : > { %v750_v31 = vadd.f32 %v749_v6, %v735_v61 }
 0x150   : > { %v751_v32 = vadd.f32 %v750_v31, %v736_v52 }
 0x152   : > { %v752_v34 = vrot.slane %v751_v32, 4 }
 0x154   : > { %v753_v36 = vadd.f32 %v752_v34, %v751_v32 }
 0x156   : > { %v754_v41 = vrot.slane %v753_v36, 2 }
 0x158   : > { %v755_v42 = vadd.f32 %v754_v41, %v753_v36 }
 0x15a   : > { %v756_v15 = vrot.slane %v755_v42, 1 }
 0x15c   : > { %v757_v44 = vadd.f32 %v756_v15, %v755_v42 }
 0x15e   : > { %v759_v45 = vmul.f32 %v758_v54, %v757_v44 }
 0x160   : > { %v1819_v46 = vsub.f32 %v1643_v16, %v759_v45  ;;  %v1822_v8 = vsub.f32 %v1651_v19, %v759_v45  ;;  %v1825_v48 = vsub.f32 %v1673_v39, %v759_v45  ;;  %v1832_v51 = vsub.f32 %v1670_v38, %v759_v45 }
 0x161   : > { %v1835_v63 = vsub.f32 %v1697_v62, %v759_v45  ;;  %v1840_v39 = vsub.f32 %v1691_v59, %v759_v45  ;;  %v1845_v2 = vsub.f32 %v1719_v24, %v759_v45  ;;  %v1850_v7 = vsub.f32 %v1716_v23, %v759_v45 }
 0x162   : > { %v776_v20 = vmul.f32 %v1625_v58, %v1819_v46  ;;  %v777_v49 = vmul.f32 %v1619_v55, %v1822_v8  ;;  %v778_v16 = vmul.f32 %v1659_v3, %v1825_v48  ;;  %v779_v1 = vmul.f32 %v1648_v17, %v1832_v51 }
 0x163   : > { %v780_v38 = vmul.f32 %v1685_v53, %v1835_v63  ;;  %v781_v35 = vmul.f32 %v1694_v57, %v1840_v39  ;;  %v1855_v10 = vsub.f32 %v1727_v30, %v759_v45  ;;  %v782_v24 = vmul.f32 %v1705_v21, %v1845_v2 }
 0x164   : > { %v792_v19 = vmul.f32 %v776_v20, %v776_v20  ;;  %v793_v0 = vmul.f32 %v777_v49, %v777_v49  ;;  %v794_v4 = vmul.f32 %v778_v16, %v778_v16  ;;  %v795_v9 = vmul.f32 %v779_v1, %v779_v1 }
 0x165   : > { %v796_v11 = vmul.f32 %v780_v38, %v780_v38  ;;  %v769_v60 = vsub.f32 %v1740_v18, %v759_v45  ;;  %v783_v28 = vmul.f32 %v1712_v14, %v1850_v7  ;;  %v797_v23 = vmul.f32 %v781_v35, %v781_v35 }
 0x166   : > { %v808_v62 = vadd.f32 %v793_v0, %v792_v19  ;;  %v770_v6 = vsub.f32 %v1751_v47, %v759_v45  ;;  %v784_v52 = vmul.f32 %v1732_v37, %v1855_v10  ;;  %v798_v31 = vmul.f32 %v782_v24, %v782_v24 }
 0x167   : > { %v771_v32 = vsub.f32 %v1762_v56, %v759_v45  ;;  %v785_v34 = vmul.f32 %v1743_v40, %v769_v60  ;;  %v799_v36 = vmul.f32 %v783_v28, %v783_v28  ;;  %v772_v18 = vsub.f32 %v1773_v5, %v759_v45 }
 0x168   : > { %v809_v59 = vadd.f32 %v808_v62, %v794_v4  ;;  %v786_v42 = vmul.f32 %v1754_v27, %v770_v6  ;;  %v800_v15 = vmul.f32 %v784_v52, %v784_v52  ;;  %v773_v20 = vsub.f32 %v1785_v12, %v759_v45 }
 0x169   : > { %v787_v47 = vmul.f32 %v1765_v33, %v771_v32  ;;  %v801_v49 = vmul.f32 %v785_v34, %v785_v34  ;;  %v774_v19 = vsub.f32 %v1795_v22, %v759_v45  ;;  %v788_v56 = vmul.f32 %v1778_v43, %v772_v18 }
 0x16a   : > { %v810_v13 = vadd.f32 %v809_v59, %v795_v9  ;;  %v802_v0 = vmul.f32 %v786_v42, %v786_v42  ;;  %v775_v38 = vsub.f32 %v1804_v29, %v759_v45  ;;  %v789_v5 = vmul.f32 %v1788_v50, %v773_v20 }
 0x16b   : > { %v803_v4 = vmul.f32 %v787_v47, %v787_v47  ;;  %v790_v35 = vmul.f32 %v1798_v25, %v774_v19  ;;  %v804_v9 = vmul.f32 %v788_v56, %v788_v56 }
 0x16c   : > { %v811_v61 = vadd.f32 %v810_v13, %v796_v11  ;;  %v791_v59 = vmul.f32 %v1807_v26, %v775_v38  ;;  %v805_v24 = vmul.f32 %v789_v5, %v789_v5 }
 0x16d   : > { %v806_v22 = vmul.f32 %v790_v35, %v790_v35 }
 0x16e   : > { %v812_v30 = vadd.f32 %v811_v61, %v797_v23  ;;  %v807_v28 = vmul.f32 %v791_v59, %v791_v59 }
 0x170   : > { %v813_v41 = vadd.f32 %v812_v30, %v798_v31 }
 0x172   : > { %v814_v44 = vadd.f32 %v813_v41, %v799_v36 }
 0x174   : > { %v815_v16 = vadd.f32 %v814_v44, %v800_v15 }
 0x176   : > { %v816_v1 = vadd.f32 %v815_v16, %v801_v49 }
 0x178   : > { %v817_v62 = vadd.f32 %v816_v1, %v802_v0  ;;  %v1069_v1 = vld [vmem:[%s1989_s4] ss:$0 sm:$0xff] }
 0x17a   : > { %v818_v12 = vadd.f32 %v817_v62, %v803_v4 }
 0x17c   : > { %v819_v11 = vadd.f32 %v818_v12, %v804_v9 }
 0x17e   : > { %v820_v13 = vadd.f32 %v819_v11, %v805_v24 }
 0x180   : > { %v821_v23 = vadd.f32 %v820_v13, %v806_v22 }
 0x182   : > { %v822_v61 = vadd.f32 %v821_v23, %v807_v28 }
 0x184   : > { %v823_v52 = vrot.slane %v822_v61, 4 }
 0x186   : > { %v824_v29 = vadd.f32 %v823_v52, %v822_v61 }
 0x188   : > { %v825_v45 = vrot.slane %v824_v29, 2 }
 0x18a   : > { %v826_v31 = vadd.f32 %v825_v45, %v824_v29 }
 0x18c   : > { %v827_v30 = vrot.slane %v826_v31, 1 }
 0x18e   : > { %v828_v34 = vadd.f32 %v827_v30, %v826_v31 }
 0x190   : > { %v829_v36 = vmul.f32 %v828_v34, %v758_v54 }
 0x192   : > { %v830_v41 = vadd.f32 1e-05, %v829_v36 }
 0x194   : > { %1294 = vrsqrt.f32 %v830_v41 }
 0x1a1   : > { %v1295_v42 = vpop.eup %1294 }
 0x1a2   : > { %v832_v15 = vmul.f32 %v1295_v42, %v1819_v46  ;;  %v833_v44 = vmul.f32 %v1295_v42, %v1822_v8  ;;  %v834_v47 = vmul.f32 %v1295_v42, %v1825_v48  ;;  %v835_v49 = vmul.f32 %v1295_v42, %v1832_v51 }
 0x1a3   : > { %v836_v16 = vmul.f32 %v1295_v42, %v1835_v63  ;;  %v837_v56 = vmul.f32 %v1295_v42, %v1840_v39  ;;  %v838_v0 = vmul.f32 %v1295_v42, %v1845_v2  ;;  %v839_v54 = vmul.f32 %v1295_v42, %v1850_v7 }
 0x1a4   : > { %v840_v46 = vmul.f32 %v1295_v42, %v1855_v10  ;;  %v841_v8 = vmul.f32 %v1295_v42, %v769_v60  ;;  %v842_v48 = vmul.f32 %v1295_v42, %v770_v6  ;;  %v843_v5 = vmul.f32 %v1295_v42, %v771_v32  ;;  %v1070_v10 = vld [vmem:[%s1990_s5] ss:$0 sm:$0xff] }
 0x1a5   : > { %v844_v51 = vmul.f32 %v1295_v42, %v772_v18  ;;  %v845_v4 = vmul.f32 %v1295_v42, %v773_v20  ;;  %v846_v63 = vmul.f32 %v1295_v42, %v774_v19  ;;  %v847_v62 = vmul.f32 %v1295_v42, %v775_v38 }
 0x1a6   : > { %v855_v39 = vmul.f32 %v1069_v1, %v832_v15  ;;  %v856_v35 = vmul.f32 %v1069_v1, %v833_v44  ;;  %v857_v2 = vmul.f32 %v1069_v1, %v834_v47  ;;  %v858_v9 = vmul.f32 %v1069_v1, %v835_v49 }
 0x1a7   : > { %v859_v7 = vmul.f32 %v1069_v1, %v836_v16  ;;  %v860_v12 = vmul.f32 %v1069_v1, %v837_v56  ;;  %v861_v59 = vmul.f32 %v1069_v1, %v838_v0  ;;  %v862_v24 = vmul.f32 %v1069_v1, %v839_v54 }
 0x1a8   : > { %v863_v60 = vmul.f32 %v1069_v1, %v840_v46  ;;  %v864_v6 = vmul.f32 %v1069_v1, %v841_v8  ;;  %v865_v32 = vmul.f32 %v1069_v1, %v842_v48  ;;  %v866_v18 = vmul.f32 %v1069_v1, %v843_v5 }
 0x1a9   : > { %v867_v20 = vmul.f32 %v1069_v1, %v844_v51  ;;  %v868_v19 = vmul.f32 %v1069_v1, %v845_v4  ;;  %v869_v38 = vmul.f32 %v1069_v1, %v846_v63  ;;  %v870_v11 = vmul.f32 %v1069_v1, %v847_v62 }
 0x1aa   : > { %v878_v22 = vadd.f32 %v1070_v10, %v855_v39  ;;  %v879_v13 = vadd.f32 %v1070_v10, %v856_v35  ;;  %v880_v28 = vadd.f32 %v1070_v10, %v857_v2  ;;  %v881_v23 = vadd.f32 %v1070_v10, %v858_v9 }
 0x1ab   : > { %v882_v61 = vadd.f32 %v1070_v10, %v859_v7  ;;  %v883_v52 = vadd.f32 %v1070_v10, %v860_v12  ;;  %v884_v29 = vadd.f32 %v1070_v10, %v861_v59  ;;  %v885_v45 = vadd.f32 %v1070_v10, %v862_v24 }
 0x1ac   : > { %v886_v31 = vadd.f32 %v1070_v10, %v863_v60  ;;  %v887_v30 = vadd.f32 %v1070_v10, %v864_v6  ;;  %v888_v34 = vadd.f32 %v1070_v10, %v865_v32  ;;  %v889_v36 = vadd.f32 %v1070_v10, %v866_v18 }
 0x1ad   : > { %v890_v41 = vadd.f32 %v1070_v10, %v867_v20  ;;  %v891_v42 = vadd.f32 %v1070_v10, %v868_v19  ;;  %v892_v15 = vadd.f32 %v1070_v10, %v869_v38  ;;  %v893_v44 = vadd.f32 %v1070_v10, %v870_v11 }
 0x1ae   : > { %v894_v47 = vmul.f32 %v1625_v58, %v878_v22  ;;  %v895_v49 = vmul.f32 %v1619_v55, %v879_v13  ;;  %v896_v16 = vmul.f32 %v1659_v3, %v880_v28  ;;  %v897_v56 = vmul.f32 %v1648_v17, %v881_v23 }
 0x1af   : > { %v898_v0 = vmul.f32 %v1685_v53, %v882_v61  ;;  %v899_v54 = vmul.f32 %v1694_v57, %v883_v52  ;;  %v900_v1 = vmul.f32 %v1705_v21, %v884_v29  ;;  %v901_v46 = vmul.f32 %v1712_v14, %v885_v45 }
 0x1b0   : > { %v902_v8 = vmul.f32 %v1732_v37, %v886_v31  ;;  %v903_v58 = vmul.f32 %v1743_v40, %v887_v30  ;;  %v904_v55 = vmul.f32 %v1754_v27, %v888_v34  ;;  %v905_v17 = vmul.f32 %v1765_v33, %v889_v36  ;;  %910 = vst [vmem:[%s1901_s23] sm:$0xff] %v894_v47 }
 0x1b1   : > { %911 = vst [vmem:[%s1901_s23 + $0x8] sm:$0xff] %v895_v49  ;;  %912 = vst [vmem:[%s1901_s23 + $0x10] sm:$0xff] %v896_v16  ;;  %v906_v3 = vmul.f32 %v1778_v43, %v890_v41  ;;  %v907_v53 = vmul.f32 %v1788_v50, %v891_v42  ;;  %v908_v57 = vmul.f32 %v1798_v25, %v892_v15 }
 0x1b2   : > { %913 = vst [vmem:[%s1901_s23 + $0x18] sm:$0xff] %v897_v56  ;;  %v909_v21 = vmul.f32 %v1807_v26, %v893_v44  ;;  %914 = vst [vmem:[%s1901_s23 + $0x20] sm:$0xff] %v898_v0 }
 0x1b3   : > { %915 = vst [vmem:[%s1901_s23 + $0x28] sm:$0xff] %v899_v54  ;;  %916 = vst [vmem:[%s1901_s23 + $0x30] sm:$0xff] %v900_v1 }
 0x1b4   : > { %917 = vst [vmem:[%s1901_s23 + $0x38] sm:$0xff] %v901_v46  ;;  %918 = vst [vmem:[%s1901_s23 + $0x40] sm:$0xff] %v902_v8 }
 0x1b5   : > { %919 = vst [vmem:[%s1901_s23 + $0x48] sm:$0xff] %v903_v58  ;;  %920 = vst [vmem:[%s1901_s23 + $0x50] sm:$0xff] %v904_v55 }
 0x1b6   : > { %921 = vst [vmem:[%s1901_s23 + $0x58] sm:$0xff] %v905_v17  ;;  %922 = vst [vmem:[%s1901_s23 + $0x60] sm:$0xff] %v906_v3 }
 0x1b7   : > { %923 = vst [vmem:[%s1901_s23 + $0x68] sm:$0xff] %v907_v53  ;;  %924 = vst [vmem:[%s1901_s23 + $0x70] sm:$0xff] %v908_v57 }
 0x1b8   : > { %925 = vst [vmem:[%s1901_s23 + $0x78] sm:$0xff] %v909_v21 }
 0x1b9   : > { %1347 = shalt.err (!%p1344_p5)
}
 0x1ba   : > { %s1348_s16 = scalar_lea.hbm %s1923_s30, 2048  ;;  %s1352_s19 = scalar_lea.hbm %s1991_s6, 8192 }
 0x1bb   : > { %p1349_p6 = scmp.ne.s32.totalorder %s1923_s30, %s1348_s16  ;;  %p1353_p9 = scmp.lt.s32.totalorder %s1923_s30, %s1991_s6 }
 0x1bc   : > { %p1354_p12 = scmp.lt.s32.totalorder %s1352_s19, %s1348_s16 }
 0x1bd   : > { %p1350_p7 = pnand %p1349_p6, %p1487_p10 }
 0x1be   : > { %p1355_p11 = por %p1354_p12, %p1353_p9 }
 0x1bf   : > { %p1351_p8 = pneg %p1350_p7 }
 0x1c1   : > { %p1356_p13 = pnand %p1355_p11, %p1351_p8 }
 0x1c3   : > { %1359 = shalt.err (!%p1356_p13)
}
 0x1c4   : > { %s1409_s22 = smov 128   ;;  %s1410_s23 = smov 8  }
 0x1c5   : > { %1205 = dma.vmem_to_hbm [thread:$0]  (%p1487_p10), %s1925_s24, 2048, %s1923_s30, %s1945_s8, %s1409_s22, %s1409_s22, %s1410_s23  }
 0x1c6 PF: > { %p1217_p0 = scmp.ge.s32.totalorder %s1400_s28, 2  ;;  %s955_s29 = sand.u32 1, %s1388_s26  }
 0x1c7   : > { %p1995_p1 = scmp.ne.s32.totalorder %s1993_s12, 0  ;;  %s956_s25 = scalar_lea.sflag [#allocation6], %s955_s29 }
 0x1c9   : > { %p1212_p2 = pnand %p1217_p0, %p1995_p1 }
 0x1cb   : > { %p1213_p3 = pneg %p1212_p2 }
 0x1cd   : > { %1383 = dma.done.wait (%p1213_p3), %s956_s25, 2048  }
 0x1ce   : > { %1385 = vsyncadd (%p1213_p3), %s956_s25, 4294965248  ;;  %p23_p4 = scmp.ge.s32.totalorder %s1474_s7, 6   ;;  %s1996_s26 = smov %s1392_s27 }
 0x1cf   : > { %s1997_s27 = smov %s1396_s0  ;;  %s1998_s0 = smov %s1485_s10 }
 0x1d0   : > { %s1999_s28 = smov %s1474_s7  ;;  %25 = sbr.rel (!%p23_p4) target bundleno = 19 (0x13), region = 83 }
 0x1d5   :  { %961 = vsyncpa [#allocation5], 1 }
 0x1d6   :  { %963 = vsyncpa [#allocation5 + $0x1], 1 }
 0x1d7   :  { %964 = vsyncpa [#allocation6], 1 }
 0x1d8   :  { %966 = vsyncpa [#allocation6 + $0x1], 1 }

</bundles_post_ra>
